<compile_context>
chip_gen: v6e
topology: v6e:2x2x1
jax: 0.10.0
libtpu: 0.0.40
codegen_flags: <defaults>
</compile_context>

<pallas_src>
import jax
import jax.numpy as jnp
from jax.experimental import pallas as pl
from jax.experimental.pallas import tpu as pltpu


def _round_up(x, m):
    return ((x + m - 1) // m) * m


def _vmem_capacity_bytes():
    try:
        return int(pltpu.get_tpu_info().vmem_capacity_bytes)
    except Exception:
        return 128 * 1024 * 1024


def _device_defaults(H):
    kind = ""
    try:
        kind = jax.devices()[0].device_kind.lower()
    except Exception:
        pass
    is_v5e = ("v5e" in kind) or ("v5 lite" in kind) or ("v5lite" in kind)
    is_v6 = "v6" in kind
    if is_v5e:
        tm, hk = 512, 2048
    elif is_v6:
        tm, hk = 1024, 2048
    else:  # v7x (64 MiB VMEM) / unknown: keep the hidden chunk smaller.
        tm, hk = 1024, 1024
    return tm, min(hk, H)


def _vmem_estimate(tm, hk, D, isz):
    # Double-buffered pipeline blocks + f32 intermediates.
    return (2 * (tm * 4                 # gate column
                 + tm * D * isz         # x tile
                 + D * hk * isz         # W1 chunk
                 + hk * 4               # b1 chunk
                 + hk * D * isz         # W2 chunk
                 + tm * D * 4)          # f32 output/accumulator tile
            + tm * hk * 4               # h intermediate (f32)
            + tm * D * 4)               # y intermediate (f32)


def _moe_kernel(g_ref, x_ref, w1_ref, b1_ref, w2_ref, o_ref):
    e = pl.program_id(1)
    hc = pl.program_id(2)

    # Output tile doubles as the f32 accumulator (same block index across e/hc).
    @pl.when(jnp.logical_and(e == 0, hc == 0))
    def _():
        o_ref[...] = jnp.zeros_like(o_ref)

    x = x_ref[...]                                              # (tm, D)  bf16
    # First matmul chunk: (tm, D) @ (D, hk) -> f32; bias + ReLU in f32.
    h = jnp.dot(x, w1_ref[...], preferred_element_type=jnp.float32)
    h = jnp.maximum(h + b1_ref[...], 0.0)                       # (tm, hk) f32
    # Second matmul chunk: (tm, hk) @ (hk, D) -> partial expert output in f32.
    y = jnp.dot(h.astype(x.dtype), w2_ref[...],
                preferred_element_type=jnp.float32)             # (tm, D) f32
    # Gate-scaled accumulation straight into the resident output tile.
    o_ref[...] += g_ref[...] * y


def feed_forward_moe(x, params, *, tm=None, hk=None, compute_dtype=jnp.bfloat16):
    """x: [B, S, D] float32.  params: dict of gate/expert weights."""
    B, S, D = x.shape
    T = B * S

    wg = params["wg"].astype(jnp.float32)    # (D, E)
    bg = params["bg"].astype(jnp.float32)    # (1, E)
    w1 = params["w1"]                        # (E, D, H)
    b1 = params["b1"]                        # (E, 1, H)
    w2 = params["w2"]                        # (E, H, D)
    b2 = params["b2"]                        # (E, 1, D)
    E = wg.shape[1]
    H = w1.shape[2]

    assert D % 128 == 0, "d_model must be a multiple of 128 for lane-dense tiles"

    tm_def, hk_def = _device_defaults(H)
    tm = tm_def if tm is None else tm
    hk = hk_def if hk is None else min(hk, H)
    assert H % hk == 0 and (hk % 128 == 0 or hk == H), "bad hidden chunk size"

    # Token tile (clamped for small inputs); generation-aware VMEM fit.
    tm = _round_up(min(tm, _round_up(T, 8)), 8)
    isz = jnp.dtype(compute_dtype).itemsize
    vmem_cap = _vmem_capacity_bytes()
    budget = int(0.70 * vmem_cap)
    est = _vmem_estimate(tm, hk, D, isz)
    while est > budget:
        if hk >= 256 and (hk // 2) % 128 == 0:
            hk //= 2
        elif tm > 256:
            tm = _round_up(max(256, tm // 2), 8)
        else:
            break
        est = _vmem_estimate(tm, hk, D, isz)

    T_pad = _round_up(T, tm)
    # Prefer >=2 token tiles so the "parallel" axis can shard across both v7x TCs.
    if T_pad // tm == 1 and tm >= 512:
        tm = _round_up(max(256, tm // 2), 8)
        T_pad = _round_up(T, tm)
        est = _vmem_estimate(tm, hk, D, isz)

    vmem_limit = int(min(max(2 * est, 32 * 1024 * 1024), int(0.85 * vmem_cap)))
    vmem_limit = min(max(vmem_limit, est + (8 << 20)), int(0.90 * vmem_cap))

    x2 = x.reshape(T, D).astype(jnp.float32)
    if T_pad != T:
        x2 = jnp.pad(x2, ((0, T_pad - T), (0, 0)))

    # --- gating + gated second-layer bias hoisted out of the kernel (f32) -------
    gw = jax.nn.softmax(x2 @ wg + bg[0], axis=-1)              # (T_pad, E) f32
    g3 = jnp.transpose(gw)[:, :, None]                         # (E, T_pad, 1)
    bias_out = gw @ b2[:, 0, :].astype(jnp.float32)            # (T_pad, D) f32

    # --- bf16 matmul operands, f32 first-layer bias -----------------------------
    n_hc = H // hk
    x2c = x2.astype(compute_dtype)
    # W1 pre-reshaped so each (D, hk) chunk is a contiguous DMA.
    w1c = (w1.astype(compute_dtype)
             .reshape(E, D, n_hc, hk)
             .transpose(0, 2, 1, 3))                           # (E, n_hc, D, hk)
    w2c = w2.astype(compute_dtype)                             # (E, H, D)
    b1f = b1.astype(jnp.float32)                               # (E, 1, H)

    out = pl.pallas_call(
        _moe_kernel,
        out_shape=jax.ShapeDtypeStruct((T_pad, D), jnp.float32),
        grid_spec=pltpu.PrefetchScalarGridSpec(
            num_scalar_prefetch=0,
            grid=(T_pad // tm, E, n_hc),
            in_specs=[
                pl.BlockSpec((None, tm, 1), lambda i, e, h: (e, i, 0)),        # gate col e
                pl.BlockSpec((tm, D), lambda i, e, h: (i, 0)),                 # x tile
                pl.BlockSpec((None, None, D, hk), lambda i, e, h: (e, h, 0, 0)),  # W1 chunk
                pl.BlockSpec((None, 1, hk), lambda i, e, h: (e, 0, h)),        # b1 chunk
                pl.BlockSpec((None, hk, D), lambda i, e, h: (e, h, 0)),        # W2 chunk
            ],
            out_specs=pl.BlockSpec((tm, D), lambda i, e, h: (i, 0)),
        ),
        compiler_params=pltpu.CompilerParams(
            dimension_semantics=("parallel", "arbitrary", "arbitrary"),
            vmem_limit_bytes=vmem_limit,
        ),
    )(g3, x2c, w1c, b1f, w2c)

    out = out[:T] + bias_out[:T]
    return out.reshape(B, S, D)


def _reference(x, params, compute_dtype=jnp.float32):
    wg, bg = params["wg"], params["bg"]
    w1, b1, w2, b2 = params["w1"], params["b1"], params["w2"], params["b2"]
    gw = jax.nn.softmax(
        jnp.einsum("bsd,de->bse", x.astype(jnp.float32), wg) + bg[0], axis=-1)
    xc = x.astype(compute_dtype)
    out = jnp.zeros(x.shape, jnp.float32)
    for e in range(wg.shape[1]):
        h = jnp.einsum("bsd,dh->bsh", xc, w1[e].astype(compute_dtype),
                       preferred_element_type=jnp.float32) + b1[e, 0]
        h = jnp.maximum(h, 0.0)
        y = jnp.einsum("bsh,hd->bsd", h.astype(compute_dtype),
                       w2[e].astype(compute_dtype),
                       preferred_element_type=jnp.float32) + b2[e, 0]
        out = out + gw[:, :, e:e + 1] * y
    return out


def _init_params(key, d_model, hidden, num_experts):
    ks = jax.random.split(key, 6)
    scale_in = 1.0 / jnp.sqrt(d_model)
    scale_h = 1.0 / jnp.sqrt(hidden)
    return {
        "wg": jax.random.normal(ks[0], (d_model, num_experts), jnp.float32) * scale_in,
        "bg": jax.random.normal(ks[1], (1, num_experts), jnp.float32) * 0.01,
        "w1": jax.random.normal(ks[2], (num_experts, d_model, hidden), jnp.float32) * scale_in,
        "b1": jax.random.normal(ks[3], (num_experts, 1, hidden), jnp.float32) * 0.01,
        "w2": jax.random.normal(ks[4], (num_experts, hidden, d_model), jnp.float32) * scale_h,
        "b2": jax.random.normal(ks[5], (num_experts, 1, d_model), jnp.float32) * 0.01,
    }


if __name__ == "__main__":
    # Small shapes consistent with the module's forward (B, S, d_model).
    B, S = 2, 8
    d_model, hidden, num_experts = 128, 256, 4

    key = jax.random.PRNGKey(0)
    kx, kp = jax.random.split(key)
    x = jax.random.normal(kx, (B, S, d_model), jnp.float32)
    params = _init_params(kp, d_model, hidden, num_experts)

    # hk=128 exercises the hidden-chunk reduction axis (2 chunks of 128).
    out = jax.block_until_ready(feed_forward_moe(x, params, hk=128))
    assert out.shape == (B, S, d_model)

    # Tight check against a bf16-matched reference (same operand casts, f32 acc).
    ref_bf16 = _reference(x, params, jnp.bfloat16)
    err_bf16 = float(jnp.max(jnp.abs(out - ref_bf16)))
    assert jnp.allclose(out, ref_bf16, atol=2e-3, rtol=2e-3), err_bf16

    # Looser check against the full-f32 module semantics (bf16 quantization noise).
    ref_f32 = _reference(x, params, jnp.float32)
    err_f32 = float(jnp.max(jnp.abs(out - ref_f32)))
    assert jnp.allclose(out, ref_f32, atol=5e-2, rtol=5e-2), err_f32

    print("KERNEL_OK")
</pallas_src>

<mosaic_0001>
module attributes {stable_mosaic.version = 11 : i64} {
  func.func @_moe_kernel(%arg0: i32, %arg1: i32, %arg2: i32, %arg3: memref<1x16x1xf32, #tpu.memory_space<vmem>>, %arg4: memref<16x128xbf16, #tpu.memory_space<vmem>>, %arg5: memref<1x1x128x128xbf16, #tpu.memory_space<vmem>>, %arg6: memref<1x1x128xf32, #tpu.memory_space<vmem>>, %arg7: memref<1x128x128xbf16, #tpu.memory_space<vmem>>, %arg8: memref<16x128xf32, #tpu.memory_space<vmem>>) attributes {dimension_semantics = [#tpu.dimension_semantics<parallel>, #tpu.dimension_semantics<arbitrary>, #tpu.dimension_semantics<arbitrary>], iteration_bounds = array<i64: 1, 4, 2>, scalar_prefetch = 0 : i64, scratch_operands = 0 : i64, tpu.core_type = #tpu.core_type<tc>, window_params = [{transform_indices = @transform_0, window_bounds = array<i64: 1, 16, 1>}, {transform_indices = @transform_1, window_bounds = array<i64: 16, 128>}, {transform_indices = @transform_2, window_bounds = array<i64: 1, 1, 128, 128>}, {transform_indices = @transform_3, window_bounds = array<i64: 1, 1, 128>}, {transform_indices = @transform_4, window_bounds = array<i64: 1, 128, 128>}, {transform_indices = @transform_5, window_bounds = array<i64: 16, 128>}]} {
    %c0_i32 = arith.constant 0 : i32
    %0 = arith.cmpi eq, %arg1, %c0_i32 : i32
    %c0_i32_0 = arith.constant 0 : i32
    %1 = arith.cmpi eq, %arg2, %c0_i32_0 : i32
    %2 = arith.andi %0, %1 : i1
    %3 = arith.extui %2 : i1 to i32
    %c0_i32_1 = arith.constant 0 : i32
    %4 = arith.cmpi ne, %3, %c0_i32_1 : i32
    scf.if %4 {
      %cst_22 = arith.constant 0.000000e+00 : f32
      %26 = vector.broadcast %cst_22 : f32 to vector<16x128xf32>
      %c0_23 = arith.constant 0 : index
      %c0_24 = arith.constant 0 : index
      %27 = vector.load %arg8[%c0_23, %c0_24] : memref<16x128xf32, #tpu.memory_space<vmem>>, vector<16x128xf32>
      tpu.vector_store %arg8[%c0_23, %c0_24], %26 {strides = array<i32>} : memref<16x128xf32, #tpu.memory_space<vmem>>, vector<16x128xf32>,
    } else {
    }
    %c0 = arith.constant 0 : index
    %c0_2 = arith.constant 0 : index
    %5 = vector.load %arg4[%c0, %c0_2] : memref<16x128xbf16, #tpu.memory_space<vmem>>, vector<16x128xbf16>
    %c0_3 = arith.constant 0 : index
    %c0_4 = arith.constant 0 : index
    %c0_5 = arith.constant 0 : index
    %c0_6 = arith.constant 0 : index
    %6 = vector.load %arg5[%c0_3, %c0_4, %c0_5, %c0_6] : memref<1x1x128x128xbf16, #tpu.memory_space<vmem>>, vector<1x1x128x128xbf16>
    %7 = vector.shape_cast %6 : vector<1x1x128x128xbf16> to vector<128x128xbf16>
    %cst = arith.constant dense<0.000000e+00> : vector<16x128xf32>
    %8 = tpu.matmul %5, %7, %cst {dimension_numbers = #tpu.dot_dimension_numbers<[1], [0], [0], [1], [0, 0, 1, 1], [], []>} : vector<16x128xbf16>, vector<128x128xbf16>, vector<16x128xf32> -> vector<16x128xf32>
    %c0_7 = arith.constant 0 : index
    %c0_8 = arith.constant 0 : index
    %c0_9 = arith.constant 0 : index
    %9 = vector.load %arg6[%c0_7, %c0_8, %c0_9] : memref<1x1x128xf32, #tpu.memory_space<vmem>>, vector<1x1x128xf32>
    %10 = vector.shape_cast %9 : vector<1x1x128xf32> to vector<1x128xf32>
    %11 = vector.broadcast %10 : vector<1x128xf32> to vector<16x128xf32>
    %12 = arith.addf %8, %11 : vector<16x128xf32>
    %cst_10 = arith.constant 0.000000e+00 : f32
    %13 = vector.broadcast %cst_10 : f32 to vector<16x128xf32>
    %14 = arith.maximumf %12, %13 : vector<16x128xf32>
    %15 = arith.truncf %14 : vector<16x128xf32> to vector<16x128xbf16>
    %c0_11 = arith.constant 0 : index
    %c0_12 = arith.constant 0 : index
    %c0_13 = arith.constant 0 : index
    %16 = vector.load %arg7[%c0_11, %c0_12, %c0_13] : memref<1x128x128xbf16, #tpu.memory_space<vmem>>, vector<1x128x128xbf16>
    %17 = vector.shape_cast %16 : vector<1x128x128xbf16> to vector<128x128xbf16>
    %cst_14 = arith.constant dense<0.000000e+00> : vector<16x128xf32>
    %18 = tpu.matmul %15, %17, %cst_14 {dimension_numbers = #tpu.dot_dimension_numbers<[1], [0], [0], [1], [0, 0, 1, 1], [], []>} : vector<16x128xbf16>, vector<128x128xbf16>, vector<16x128xf32> -> vector<16x128xf32>
    %c0_15 = arith.constant 0 : index
    %c0_16 = arith.constant 0 : index
    %19 = vector.load %arg8[%c0_15, %c0_16] : memref<16x128xf32, #tpu.memory_space<vmem>>, vector<16x128xf32>
    %c0_17 = arith.constant 0 : index
    %c0_18 = arith.constant 0 : index
    %c0_19 = arith.constant 0 : index
    %20 = vector.load %arg3[%c0_17, %c0_18, %c0_19] : memref<1x16x1xf32, #tpu.memory_space<vmem>>, vector<1x16x1xf32>
    %21 = vector.shape_cast %20 : vector<1x16x1xf32> to vector<16x1xf32>
    %22 = vector.broadcast %21 : vector<16x1xf32> to vector<16x128xf32>
    %23 = arith.mulf %22, %18 : vector<16x128xf32>
    %24 = arith.addf %19, %23 : vector<16x128xf32>
    %c0_20 = arith.constant 0 : index
    %c0_21 = arith.constant 0 : index
    %25 = vector.load %arg8[%c0_20, %c0_21] : memref<16x128xf32, #tpu.memory_space<vmem>>, vector<16x128xf32>
    tpu.vector_store %arg8[%c0_20, %c0_21], %24 {strides = array<i32>} : memref<16x128xf32, #tpu.memory_space<vmem>>, vector<16x128xf32>,
    return
  }
  func.func @transform_0(%arg0: i32, %arg1: i32, %arg2: i32) -> (i32, i32, i32) {
    %c0_i32 = arith.constant 0 : i32
    %c0_i32_0 = arith.constant 0 : i32
    return %arg1, %arg0, %c0_i32 : i32, i32, i32
  }
  func.func @transform_1(%arg0: i32, %arg1: i32, %arg2: i32) -> (i32, i32) {
    %c0_i32 = arith.constant 0 : i32
    %c0_i32_0 = arith.constant 0 : i32
    return %arg0, %c0_i32 : i32, i32
  }
  func.func @transform_2(%arg0: i32, %arg1: i32, %arg2: i32) -> (i32, i32, i32, i32) {
    %c0_i32 = arith.constant 0 : i32
    %c0_i32_0 = arith.constant 0 : i32
    %c0_i32_1 = arith.constant 0 : i32
    return %arg1, %arg2, %c0_i32, %c0_i32_0 : i32, i32, i32, i32
  }
  func.func @transform_3(%arg0: i32, %arg1: i32, %arg2: i32) -> (i32, i32, i32) {
    %c0_i32 = arith.constant 0 : i32
    %c0_i32_0 = arith.constant 0 : i32
    return %arg1, %c0_i32, %arg2 : i32, i32, i32
  }
  func.func @transform_4(%arg0: i32, %arg1: i32, %arg2: i32) -> (i32, i32, i32) {
    %c0_i32 = arith.constant 0 : i32
    %c0_i32_0 = arith.constant 0 : i32
    return %arg1, %arg2, %c0_i32 : i32, i32, i32
  }
  func.func @transform_5(%arg0: i32, %arg1: i32, %arg2: i32) -> (i32, i32) {
    %c0_i32 = arith.constant 0 : i32
    %c0_i32_0 = arith.constant 0 : i32
    return %arg0, %c0_i32 : i32, i32
  }
}

</mosaic_0001>

<bundles_post_ra>
// kernel: tpu_custom_call.1
= control target key start
LH: loop header
LB: loop body
LE: loop exit
PB: predicated region body
PF: predicated region fallthrough
CT: control target
= control target key end

     0   :  { %s1426_s0 = inlined_call_operand.vmem [shape: f32[4,16,1], index: 0, kind: input, shape index: {}]   ;;  %s1427_s1 = inlined_call_operand.vmem [shape: bf16[16,128], index: 1, kind: input, shape index: {}]   ;;  %s1428_s2 = inlined_call_operand.hbm [shape: bf16[4,2,128,128], index: 2, kind: input, shape index: {}]   ;;  %s1429_s3 = inlined_call_operand.vmem [shape: f32[4,1,256], index: 3, kind: input, shape index: {}]   ;;  %s1430_s4 = inlined_call_operand.hbm [shape: bf16[4,256,128], index: 4, kind: input, shape index: {}]   ;;  %s1431_s5 = inlined_call_operand.hbm [shape: f32[16,128], index: 5, kind: output, shape index: {}]  }
   0x1   :  { %1436 = sst [smem:[#allocation13_spill]] %s1428_s2 }
   0x2   :  { %10 = vsyncpa [#allocation3], 0 }
   0x3   :  { %12 = vsyncpa [#allocation3 + $0x1], 0 }
   0x4   :  { %13 = vsyncpa [#allocation6], 0 }
   0x5   :  { %15 = vsyncpa [#allocation6 + $0x1], 0 }
   0x6   :  { %16 = vsyncpa [#allocation4], 0  ;;  %s1209_s18 = smov 0   ;;  %s1211_s19 = smov 0  }
   0x7   :  { %s1213_s20 = smov 0   ;;  %s1215_s21 = smov 0  }
   0x8   :  { %s1217_s22 = smov 0   ;;  %s1219_s23 = smov 0  }
   0x9   :  { %s1221_s24 = smov 0   ;;  %s1223_s25 = smov 0  }
   0xa LB: > { %s1432_s26 = sadd.s32 4294967295, %s1166_s25   ;;  %s34_s27 = sadd.s32 1, %s1158_s23  ;;  %s1166_s25 = sphi %s1223_s25, %s22_s25   ;;  %s1162_s24 = sphi %s1221_s24, %s1455_s24   ;;  %s1158_s23 = sphi %s1219_s23, %s1454_s23   ;;  %s1154_s22 = sphi %s1217_s22, %s1453_s22   ;;  %s1150_s21 = sphi %s1215_s21, %s1452_s21   ;;  %s1146_s20 = sphi %s1213_s20, %s1451_s20   ;;  %s1142_s19 = sphi %s1211_s19, %s1450_s19   ;;  %s1138_s18 = sphi %s1209_s18, %s1449_s18  }
   0xb   : > { %p35_p0 = scmp.ge.s32.totalorder %s34_s27, 2  ;;  %s37_s28 = sadd.s32 1, %s1162_s24 }
   0xc   : > { %s104_s29 = sadd.s32 1, %s1146_s20  ;;  %p111_p1 = scmp.ne.s32.totalorder %s1146_s20, %s1142_s19 }
   0xd   : > { %s1457_s27 = smov (%p35_p0, %s34_s27), 0  ;;  %s1459_s28 = smov (!%p35_p0, %s37_s28), %s1162_s24 }
   0xe   : > { %1437 = sst [smem:[#allocation11_spill]] %s1457_s27  ;;  %s100_s30 = ssub.s32 %s1158_s23, %s1457_s27 }
   0xf   : > { %p112_p2 = scmp.eq.s32.totalorder %s1166_s25, 0  ;;  %p39_p3 = scmp.ge.s32.totalorder %s1459_s28, 4 }
  0x10   : > { %p117_p4 = scmp.ne.s32.totalorder %s1142_s19, %s1138_s18  ;;  %p118_p6 = scmp.eq.s32.totalorder %s1432_s26, 0 }
  0x11   : > { %p1260_p5 = por %p112_p2, %p111_p1  ;;  %s1461_s28 = smov (%p39_p3, %s1459_s28), 0 }
  0x12   : > { %1439 = sst [smem:[#allocation12_spill]] %s1461_s28  ;;  %p1268_p7 = por %p118_p6, %p117_p4 }
  0x13   : > { %s99_s8 = ssub.s32 %s1162_s24, %s1461_s28  ;;  %p918_p8 = scmp.lt.s32.totalorder %s1166_s25, 8 }
  0x14   : > { %s101_s9 = sor.u32 %s100_s30, %s99_s8  ;;  %s1276_s10 = sand.u32 1, %s1146_s20  }
  0x15   : > { %p102_p9 = scmp.eq.s32.totalorder %s101_s9, 0  ;;  %s1433_s11 = sshll.u32 %s1276_s10, 6 }
  0x16   : > { %s809_s12 = sshll.u32 %s1158_s23, 4  ;;  %s810_s14 = sshll.u32 %s1162_s24, 5 }
  0x17   : > { %s1281_s13 = scalar_select %p102_p9, %s1146_s20, %s104_s29  }
  0x18   : > { %s1284_s15 = sadd.s32 %s810_s14, %s809_s12  ;;  %s249_s16 = scalar_lea.vmem [#allocation2], %s1433_s11 }
  0x19   : > { %s258_s17 = sshll.u32 %s249_s16, 4  ;;  %s811_s18 = sshll.u32 %s1284_s15, 6  ;;  %s259_s17 = int_to_ptr.vmem [resolvable:$true] %s258_s17 }
  0x1a   : > { %s1441_s2 = sld [smem:[#allocation13_spill]]  ;;  %p1296_p10 = pnand %p918_p8, %p1260_p5 }
  0x1b   : > { %p816_p11 = scmp.ge.s32.totalorder %s1166_s25, 1  ;;  %s246_s29 = scalar_lea.sflag [#allocation3], %s1276_s10 }
  0x1c   : > { %p1014_p12 = pneg %p1296_p10  ;;  %s1025_s12 = scalar_lea.vmem %s259_s17, 1024 }
  0x1d   : > { %p1026_p13 = scmp.ne.s32.totalorder %s259_s17, %s1025_s12  ;;  %s1168_s14 = smov [#allocation2]  }
  0x1e   : > { %s1030_s15 = sshll.u32 %s1168_s14, 4  ;;  %s1031_s15 = int_to_ptr.vmem [resolvable:$false] %s1030_s15 }
  0x1f   : > { %p1028_p0 = pnand %p1026_p13, %p1014_p12  ;;  %s1032_s6 = scalar_lea.vmem %s1031_s15, 2048 }
  0x20   : > { %s257_s26 = scalar_lea.hbm %s1441_s2, %s811_s18  ;;  %p1033_p2 = scmp.lt.s32.totalorder %s259_s17, %s1031_s15 }
  0x21   : > { %p1029_p1 = pneg %p1028_p0  ;;  %p1034_p3 = scmp.lt.s32.totalorder %s1032_s6, %s1025_s12 }
  0x23   : > { %p1035_p4 = por %p1034_p3, %p1033_p2 }
  0x25   : > { %p1036_p5 = pnand %p1035_p4, %p1029_p1 }
  0x27   : > { %1039 = shalt.err (!%p1036_p5)
}
  0x28   : > { %s1169_s16 = smov 64   ;;  %s1170_s30 = smov 4  }
  0x29   : > { %914 = dma.hbm_to_vmem [thread:$0]  (!%p1296_p10), %s257_s26, 1024, %s259_s17, %s246_s29, %s1169_s16, %s1169_s16, %s1170_s30  }
  0x2a   : > { %p299_p6 = scmp.lt.s32.totalorder %s1166_s25, 9  ;;  %s290_s11 = scalar_lea.hbm %s1430_s4, %s811_s18 }
  0x2b   : > { %s1444_s15 = sshll.u32 %s1276_s10, 6  ;;  %s279_s28 = scalar_lea.sflag [#allocation6], %s1276_s10 }
  0x2c   : > { %p1315_p8 = pnand %p816_p11, %p299_p6  ;;  %s282_s6 = scalar_lea.vmem [#allocation5], %s1444_s15 }
  0x2d   : > { %s291_s2 = sshll.u32 %s282_s6, 4  ;;  %s1171_s26 = smov [#allocation5]   ;;  %s292_s2 = int_to_ptr.vmem [resolvable:$true] %s291_s2 }
  0x2e   : > { %s1053_s27 = scalar_lea.vmem %s292_s2, 1024  ;;  %s1058_s17 = sshll.u32 %s1171_s26, 4  ;;  %s1059_s17 = int_to_ptr.vmem [resolvable:$false] %s1058_s17 }
  0x2f   : > { %p1054_p9 = scmp.ne.s32.totalorder %s292_s2, %s1053_s27  ;;  %s1060_s18 = scalar_lea.vmem %s1059_s17, 2048 }
  0x30   : > { %p1061_p1 = scmp.lt.s32.totalorder %s292_s2, %s1059_s17  ;;  %p1062_p11 = scmp.lt.s32.totalorder %s1060_s18, %s1053_s27 }
  0x31   : > { %p1056_p13 = pnand %p1054_p9, %p1014_p12 }
  0x32   : > { %p1063_p2 = por %p1062_p11, %p1061_p1 }
  0x33   : > { %p1057_p0 = pneg %p1056_p13 }
  0x35   : > { %p1064_p3 = pnand %p1063_p2, %p1057_p0 }
  0x37   : > { %1067 = shalt.err (!%p1064_p3)
}
  0x38   : > { %917 = dma.hbm_to_vmem [thread:$0]  (!%p1296_p10), %s290_s11, 1024, %s292_s2, %s279_s28, %s1169_s16, %s1169_s16, %s1170_s30  }
  0x39   : > { %303 = sbr.rel (%p1315_p8) target bundleno = 522 (0x20a), region = 40  ;;  %s305_s10 = sand.u32 (!%p1315_p8), 1, %s1142_s19  }
  0x3a   : > { %s817_s29 = sshll.u32 (!%p1315_p8), %s305_s10, 6  ;;  %s306_s8 = scalar_lea.sflag (!%p1315_p8), [#allocation3], %s305_s10 }
  0x3b   : > { %s1330_s14 = scalar_lea.vmem (!%p1315_p8), [#allocation2], %s817_s29 }
  0x3e   : > { %1125 = dma.done.wait (%p1268_p7), %s306_s8, 1024  }
  0x3f   : > { %1127 = vsyncadd (%p1268_p7), %s306_s8, 4294966272  ;;  %s315_s27 = scalar_lea.sflag [#allocation6], %s305_s10  ;;  %s1336_s15 = scalar_lea.vmem [#allocation5], %s817_s29 }
  0x40   : > { %1129 = dma.done.wait (%p1268_p7), %s315_s27, 1024  }
  0x41   : > { %1131 = vsyncadd (%p1268_p7), %s315_s27, 4294966272  ;;  %p367_p10 = scmp.lt.s32.totalorder %s1154_s22, 3  ;;  %p384_p12 = scmp.lt.s32.totalorder %s1150_s21, 1 }
  0x42   : > { %p392_p4 = scmp.eq.s32.totalorder %s1154_s22, 0  ;;  %p393_p5 = scmp.eq.s32.totalorder %s1150_s21, 0 }
  0x43   : > { %s1463_s22 = smov (!%p367_p10, %s1154_s22), 3  ;;  %s1465_s21 = smov (!%p384_p12, %s1150_s21), 1 }
  0x44   : > { %s844_s2 = sshll.u32 %s1463_s22, 4  ;;  %s821_s28 = sshll.u32 %s1463_s22, 1 }
  0x45   : > { %s1351_s16 = scalar_lea.vmem %s1426_s0, %s844_s2  ;;  %s1353_s7 = sadd.s32 %s821_s28, %s1465_s21 }
  0x46   : > { %s388_s6 = scalar_lea.vmem %s1429_s3, %s1353_s7  ;;  %p394_p7 = pnand %p393_p5, %p392_p4 }
  0x48   : > { %397 = sbr.rel (%p394_p7) target bundleno = 79 (0x4f), region = 52 }
  0x4d   : > { %v1172_v0 = vmov 0.0  }
  0x4e   : > { %398 = vst [vmem:[#allocation7] sm:$0xff] %v1172_v0  ;;  %399 = vst [vmem:[#allocation7 + $0x8] sm:$0xff] %v1172_v0 }
  0x4f PF: > { %v995_v1 = vld [vmem:[%s1330_s14 + $0x38] sm:$0xff]   ;;  %v1173_v2 = vmov 0.0   ;;  %v996_v3 = vld [vmem:[%s1330_s14 + $0x30] sm:$0xff]   ;;  %vm1174_vm0 = vmmov 0   ;;  %v997_v4 = vld [vmem:[%s1330_s14 + $0x28] sm:$0xff]   ;;  %v1175_v20 = vmov 0  }
  0x50   : > { %863 = vmatprep.subr.bf16.mxu0 %v1173_v2  ;;  %883 = vmatprep.subr.bf16.mxu1 %v1173_v2  ;;  %v1004_v5 = vld [vmem:[%s1336_s15 + $0x38] sm:$0xff]   ;;  %v998_v6 = vld [vmem:[%s1330_s14 + $0x20] sm:$0xff]   ;;  %v1005_v7 = vld [vmem:[%s1336_s15 + $0x30] sm:$0xff]   ;;  %s1176_s18 = smov [#allocation7]   ;;  %s1445_s29 = sadd.s32 4294967295, %s1166_s25  }
  0x51   : > { %864 = vmatpush3.bf16.msra.mxu0 %v995_v1  ;;  %879 = vmatprep.mubr.msk.bf16.mxu0 %vm1174_vm0, %v1173_v2  ;;  %v999_v8 = vld [vmem:[%s1330_s14 + $0x18] sm:$0xff]   ;;  %v1006_v9 = vld [vmem:[%s1336_s15 + $0x28] sm:$0xff]   ;;  %v1000_v10 = vld [vmem:[%s1330_s14 + $0x10] sm:$0xff]   ;;  %s657_s10 = sshll.u32 %s1176_s18, 4  ;;  %p1387_p6 = scmp.eq.s32.totalorder %s1445_s29, 7  ;;  %s658_s10 = int_to_ptr.vmem [resolvable:$true] %s657_s10 }
  0x52   : > { %865 = vmatprep.subr.bf16.mxu0 %v1173_v2  ;;  %899 = vmatprep.mubr.msk.bf16.mxu1 %vm1174_vm0, %v1173_v2  ;;  %v1007_v11 = vld [vmem:[%s1336_s15 + $0x20] sm:$0xff]   ;;  %v1001_v12 = vld [vmem:[%s1330_s14 + $0x8] sm:$0xff]   ;;  %v1008_v13 = vld [vmem:[%s1336_s15 + $0x18] sm:$0xff]   ;;  %p1075_p0 = scmp.lt.s32.totalorder %s658_s10, %s658_s10 }
  0x53   : > { %884 = vmatpush3.bf16.msra.mxu1 %v1004_v5  ;;  %v1002_v14 = vld [vmem:[%s1330_s14] sm:$0xff]   ;;  %v1009_v16 = vld [vmem:[%s1336_s15 + $0x10] sm:$0xff]   ;;  %v1010_v17 = vld [vmem:[%s1336_s15 + $0x8] sm:$0xff]   ;;  %994 = vset.pattern.permute.xlu0 %v1175_v20  ;;  %s1068_s14 = scalar_lea.vmem %s658_s10, 256 }
  0x54   : > { %885 = vmatprep.subr.bf16.mxu1 %v1173_v2  ;;  %v1003_v15 = vld [vmem:[%s1427_s1] sm:$0xff]   ;;  %v631_v21 = vld [vmem:[%s1351_s16 + $0x8] sm:$0xff]  ;;  %p1069_p8 = scmp.ne.s32.totalorder %s658_s10, %s1068_s14  ;;  %p1076_p1 = scmp.lt.s32.totalorder %s1068_s14, %s1068_s14 }
  0x55   : > { %866 = vmatpush3.bf16.msra.mxu0 %v996_v3  ;;  %v1011_v18 = vld [vmem:[%s1336_s15] sm:$0xff]   ;;  %v629_v40 = vld [vmem:[#allocation7 + $0x8] sm:$0xff] }
  0x56   : > { %867 = vmatprep.subr.bf16.mxu0 %v1173_v2  ;;  %v630_v19 = vld [vmem:[%s1351_s16] sm:$0xff]  ;;  %p1070_p9 = pnand %p1069_p8, %p1387_p6  ;;  %p1077_p11 = por %p1076_p1, %p1075_p0 }
  0x57   : > { %886 = vmatpush3.bf16.msra.mxu1 %v1005_v7  ;;  %634 = vperm.xlu0 %994, %v630_v19   ;;  %v822_v22 = vld [vmem:[%s388_s6] ss:$0 sm:$0xff] }
  0x58   : > { %887 = vmatprep.subr.bf16.mxu1 %v1173_v2  ;;  %v628_v34 = vld [vmem:[#allocation7] sm:$0xff]  ;;  %p1071_p13 = pneg %p1070_p9 }
  0x59   : > { %868 = vmatpush3.bf16.msra.mxu0 %v997_v4 }
  0x5a   : > { %869 = vmatprep.subr.bf16.mxu0 %v1173_v2  ;;  %p1078_p2 = pnand %p1077_p11, %p1071_p13 }
  0x5b   : > { %888 = vmatpush3.bf16.msra.mxu1 %v1006_v9  ;;  %639 = vperm.xlu0 %994, %v631_v21  }
  0x5c   : > { %889 = vmatprep.subr.bf16.mxu1 %v1173_v2 }
  0x5d   : > { %870 = vmatpush3.bf16.msra.mxu0 %v998_v6 }
  0x5e   : > { %871 = vmatprep.subr.bf16.mxu0 %v1173_v2 }
  0x5f   : > { %890 = vmatpush3.bf16.msra.mxu1 %v1007_v11 }
  0x60   : > { %891 = vmatprep.subr.bf16.mxu1 %v1173_v2 }
  0x61   : > { %872 = vmatpush3.bf16.msra.mxu0 %v999_v8 }
  0x62   : > { %873 = vmatprep.subr.bf16.mxu0 %v1173_v2 }
  0x63   : > { %892 = vmatpush3.bf16.msra.mxu1 %v1008_v13 }
  0x64   : > { %893 = vmatprep.subr.bf16.mxu1 %v1173_v2 }
  0x65   : > { %874 = vmatpush3.bf16.msra.mxu0 %v1000_v10 }
  0x66   : > { %875 = vmatprep.subr.bf16.mxu0 %v1173_v2 }
  0x67   : > { %894 = vmatpush3.bf16.msra.mxu1 %v1009_v16 }
  0x68   : > { %895 = vmatprep.subr.bf16.mxu1 %v1173_v2 }
  0x69   : > { %876 = vmatpush3.bf16.msra.mxu0 %v1001_v12 }
  0x6a   : > { %877 = vmatprep.subr.bf16.mxu0 %v1173_v2 }
  0x6b   : > { %896 = vmatpush3.bf16.msra.mxu1 %v1010_v17 }
  0x6c   : > { %897 = vmatprep.subr.bf16.mxu1 %v1173_v2 }
  0x6d   : > { %878 = vmatpush3.bf16.msra.mxu0 %v1002_v14 }
  0x6f   : > { %898 = vmatpush3.bf16.msra.mxu1 %v1011_v18 }
  0x70   : > { %880 = vmatmul.mubr.bf16.vlgmr.msra.gmra.mxu0 %v1003_v15 }
  0xd2   : > { %v635_v32 = vpop.permute.xlu0 %634 }
  0xd6   : > { %v640_v38 = vpop.permute.xlu0 %639 }
 0x130   : > { %v513_v23 = vpop.f32.mrf.mxu0 }
 0x131   : > { %v514_v25 = vadd.f32 %v822_v22, %v513_v23 }
 0x132   : > { %v881_v24 = vpop.f32.mrf.mxu0 }
 0x133   : > { %v520_v29 = vmax.f32 %v514_v25, 0.0 }
 0x134   : > { %v516_v26 = vpop.f32.mrf.mxu0 }
 0x135   : > { %v517_v27 = vadd.f32 %v822_v22, %v516_v26 }
 0x136   : > { %v882_v28 = vpop.f32.mrf.mxu0 }
 0x137   : > { %v521_v30 = vmax.f32 %v517_v27, 0.0 }
 0x139   : > { %v522_v31 = vpack.c.bf16 %v521_v30, %v520_v29 }
 0x13b   : > { %900 = vmatmul.mubr.bf16.vlgmr.msra.gmra.mxu1 %v522_v31 }
 0x1fb   : > { %v621_v33 = vpop.f32.mrf.mxu1 }
 0x1fc   : > { %v642_v35 = vmul.f32 %v635_v32, %v621_v33 }
 0x1fd   : > { %v901_v36 = vpop.f32.mrf.mxu1 }
 0x1fe   : > { %v644_v37 = vadd.f32 %v642_v35, %v628_v34 }
 0x1ff   : > { %v624_v39 = vpop.f32.mrf.mxu1 }
 0x200   : > { %646 = vst [vmem:[#allocation7] sm:$0xff] %v644_v37  ;;  %v643_v41 = vmul.f32 %v640_v38, %v624_v39 }
 0x201   : > { %v902_v42 = vpop.f32.mrf.mxu1 }
 0x202   : > { %v645_v43 = vadd.f32 %v643_v41, %v629_v40 }
 0x204   : > { %647 = vst [vmem:[#allocation7 + $0x8] sm:$0xff] %v645_v43 }
 0x205   : > { %1081 = shalt.err (!%p1078_p2)
}
 0x206   : > { %s1177_s27 = smov 128   ;;  %s1178_s15 = smov 8  }
 0x207   : > { %908 = dma.vmem_to_hbm [thread:$0]  (%p1387_p6), %s658_s10, 256, %s1431_s5, [#allocation4], %s1177_s27, %s1177_s27, %s1178_s15  }
 0x208   : > { %1133 = dma.done.wait (%p1387_p6), [#allocation4], 256  }
 0x209   : > { %1135 = vsyncadd (%p1387_p6), [#allocation4], 4294967040 }
 0x20a PF: > { %s22_s25 = sadd.s32 1, %s1166_s25   ;;  %s1447_s11 = sld [smem:[#allocation11_spill]] }
 0x20b   : > { %p19_p3 = scmp.ge.s32.totalorder %s22_s25, 10   ;;  %s1448_s9 = sld [smem:[#allocation12_spill]] }
 0x20c   : > { %s1449_s18 = smov %s1142_s19  ;;  %s1450_s19 = smov %s1146_s20 }
 0x20d   : > { %s1451_s20 = smov %s1281_s13  ;;  %s1452_s21 = smov %s1158_s23 }
 0x20e   : > { %s1453_s22 = smov %s1162_s24  ;;  %21 = sbr.rel (!%p19_p3) target bundleno = 10 (0xa), region = 104 }
 0x210   : > { %s1454_s23 = smov %s1447_s11 }
 0x211   : > { %s1455_s24 = smov %s1448_s9 }
 0x213   :  { %673 = vsyncpa [#allocation3], 1 }
 0x214   :  { %675 = vsyncpa [#allocation3 + $0x1], 1 }
 0x215   :  { %676 = vsyncpa [#allocation6], 1 }
 0x216   :  { %678 = vsyncpa [#allocation6 + $0x1], 1 }
 0x217   :  { %679 = vsyncpa [#allocation4], 1 }
 0x218   :  { %681 = vsyncpa [#allocation4 + $0x1], 1 }

</bundles_post_ra>
